<compile_context>
chip_gen: v7x
topology: tpu7x:2x2x1
jax: 0.10.0
libtpu: 0.0.40
codegen_flags: <defaults>
</compile_context>

<pallas_src>
import math

import jax
import jax.numpy as jnp
from jax.experimental import pallas as pl
from jax.experimental.pallas import tpu as pltpu


# (in, out) for each of the 6 Linear layers, in forward order.
_LAYER_DIMS = [(12, 10), (10, 8), (8, 6), (6, 8), (8, 10), (10, 12)]
IN_FEATURES = 12
ENC_FEATURES = 6
OUT_FEATURES = 12


def _round_up(x, m):
    return (x + m - 1) // m * m


def _layer_layout():
    """Sublane offsets of each layer block inside the packed parameter slab."""
    offs, off = [], 0
    for (_fi, fo) in _LAYER_DIMS:
        offs.append(off)
        off += _round_up(fo, 8)  # keep every block 8-sublane aligned
    return offs, off


_OFFS, _SLAB_ROWS = _layer_layout()  # offsets, total rows (= 72)
_SLAB_LANES = 128


def pack_params(params):
    """Pack [w1,b1,...,w6,b6] (w:(in,out), b:(1,out)) into one (72,128) slab.

    Layer `l` occupies rows [_OFFS[l], _OFFS[l]+out): W^T in cols [0, in),
    bias column at col `in`.
    """
    slab = jnp.zeros((_SLAB_ROWS, _SLAB_LANES), jnp.float32)
    for li, (fi, fo) in enumerate(_LAYER_DIMS):
        w = params[2 * li].astype(jnp.float32)       # (in, out)
        b = params[2 * li + 1].astype(jnp.float32)   # (1, out)
        off = _OFFS[li]
        slab = slab.at[off:off + fo, 0:fi].set(w.T)          # (out, in)
        slab = slab.at[off:off + fo, fi:fi + 1].set(b.T)     # (out, 1)
    return slab


def _autoencoder_kernel(slab_ref, x_ref, enc_ref, dec_ref):
    def layer(h, li):
        fi, fo = _LAYER_DIMS[li]
        off = _OFFS[li]
        w = slab_ref[off:off + fo, 0:fi]          # (out, in)   static slice
        b = slab_ref[off:off + fo, fi:fi + 1]     # (out, 1)    static slice
        return jnp.dot(w, h, preferred_element_type=jnp.float32) + b

    x = x_ref[...]                                # (12, TILE_B), batch on lanes

    # ---------------- encoder ----------------
    h = jnp.maximum(layer(x, 0), 0.0)             # Linear(12,10) + ReLU
    h = jnp.maximum(layer(h, 1), 0.0)             # Linear(10, 8) + ReLU
    enc = layer(h, 2)                             # Linear( 8, 6)  (fc1)
    enc_ref[...] = enc.astype(enc_ref.dtype)

    # ---------------- decoder ----------------
    d = jnp.maximum(layer(enc, 3), 0.0)           # Linear( 6, 8) + ReLU
    d = jnp.maximum(layer(d, 4), 0.0)             # Linear( 8,10) + ReLU
    logits = layer(d, 5)                          # Linear(10,12)
    # Exact sigmoid.  exp -> EUP; the divide is cheap and both EUP and VALU
    # have huge slack relative to the HBM DMA, so this is free accuracy.
    dec_ref[...] = (1.0 / (1.0 + jnp.exp(-logits))).astype(dec_ref.dtype)


def _choose_tile(batch, tile_b):
    """Pick the batch tile: multiple of 128 lanes, capped by the padded batch,
    and (when the batch allows) small enough that the grid has >= 2 steps so
    v7x's two TensorCores both get work on the "parallel" axis."""
    b128 = _round_up(max(batch, 1), 128)
    tile = min(_round_up(max(tile_b, 128), 128), b128)
    if b128 // tile < 2 and b128 >= 256:
        tile = _round_up(pl.cdiv(b128, 2), 128)
    return tile


def autoencoder_forward_feature_major(xt, params, *, tile_b=32768):
    """Zero-layout-overhead entry point (feature-major end-to-end).

    xt: (12, B) float32 with the batch on the minor axis.
    Returns (encoded (6, B), decoded (12, B)).

    If the surrounding graph keeps activations feature-major, this path has no
    wrapper transposes/pads at all and runs at the HBM roofline.
    """
    xt = xt.astype(jnp.float32)
    assert xt.shape[0] == IN_FEATURES, f"expected ({IN_FEATURES}, B), got {xt.shape}"
    B = xt.shape[1]

    tile = _choose_tile(B, tile_b)
    B_pad = _round_up(max(B, 1), tile)
    if B_pad != B:
        # Zero-pad the batch tail; padded columns flow through harmlessly and
        # are sliced off below.
        xt = jnp.pad(xt, ((0, 0), (0, B_pad - B)))
    grid = (B_pad // tile,)

    slab = pack_params(params)

    # Advisory cost estimate (mem-bound regime: MXU is tiny at K,N <= 12).
    flops = 2 * B_pad * sum(fi * fo for fi, fo in _LAYER_DIMS)
    bytes_accessed = 4 * B_pad * (IN_FEATURES + ENC_FEATURES + OUT_FEATURES) + slab.size * 4
    transcendentals = OUT_FEATURES * B_pad  # one exp per decoded element

    # Scoped-VMEM budget: ~320 B/lane of double-buffered pipeline tiles
    # (after sublane padding) plus headroom for feature-major temporaries.
    # Clamped to stay far under v7x's 64 MiB physical VMEM (v5e/v6e: 128 MiB),
    # and explicitly raised above v5e's 16 MiB default scope for large tiles.
    vmem_limit = int(min(max(704 * tile + (2 << 20), 8 << 20), 48 << 20))

    enc_t, dec_t = pl.pallas_call(
        _autoencoder_kernel,
        out_shape=(
            jax.ShapeDtypeStruct((ENC_FEATURES, B_pad), jnp.float32),   # encoded
            jax.ShapeDtypeStruct((OUT_FEATURES, B_pad), jnp.float32),   # decoded
        ),
        grid_spec=pltpu.PrefetchScalarGridSpec(
            num_scalar_prefetch=0,
            grid=grid,
            in_specs=[
                # Parameter slab: constant index_map -> DMA'd once, VMEM-resident.
                pl.BlockSpec((_SLAB_ROWS, _SLAB_LANES), lambda i: (0, 0)),
                # Activations: tiled along the batch (lane) axis.
                pl.BlockSpec((IN_FEATURES, tile), lambda i: (0, i)),
            ],
            out_specs=[
                pl.BlockSpec((ENC_FEATURES, tile), lambda i: (0, i)),
                pl.BlockSpec((OUT_FEATURES, tile), lambda i: (0, i)),
            ],
        ),
        compiler_params=pltpu.CompilerParams(
            dimension_semantics=("parallel",),
            vmem_limit_bytes=vmem_limit,
        ),
        cost_estimate=pl.CostEstimate(
            flops=flops,
            transcendentals=transcendentals,
            bytes_accessed=bytes_accessed,
        ),
    )(slab, xt)

    if B_pad != B:
        enc_t = enc_t[:, :B]
        dec_t = dec_t[:, :B]
    return enc_t, dec_t


def autoencoder_forward(x, params, *, tile_b=32768):
    """PyTorch-compatible interface. x: (B, 12) float32.
    params: flat list [w1,b1,...,w6,b6] with w:(in,out), b:(1,out).

    Returns (encoded (B,6), decoded (B,12)), matching the module's forward.
    The x.T / .T here are the only remaining layout copies; use
    `autoencoder_forward_feature_major` to avoid them entirely.
    """
    x = x.astype(jnp.float32)
    enc_t, dec_t = autoencoder_forward_feature_major(x.T, params, tile_b=tile_b)
    return enc_t.T, dec_t.T


def init_params(key):
    """Deterministic parameter init mimicking PyTorch's nn.Linear default
    (uniform in [-1/sqrt(fan_in), 1/sqrt(fan_in)]). Weights stored as (in, out)."""
    params = []
    keys = jax.random.split(key, 2 * len(_LAYER_DIMS))
    for i, (fan_in, fan_out) in enumerate(_LAYER_DIMS):
        bound = 1.0 / math.sqrt(fan_in)
        w = jax.random.uniform(
            keys[2 * i], (fan_in, fan_out), jnp.float32, minval=-bound, maxval=bound
        )
        b = jax.random.uniform(
            keys[2 * i + 1], (1, fan_out), jnp.float32, minval=-bound, maxval=bound
        )
        params.extend([w, b])
    return params


def reference_forward(x, params):
    """Pure-JAX reference mirroring the PyTorch forward exactly."""
    w1, b1, w2, b2, w3, b3, w4, b4, w5, b5, w6, b6 = params
    h = jnp.maximum(x @ w1 + b1, 0.0)
    h = jnp.maximum(h @ w2 + b2, 0.0)
    enc = h @ w3 + b3
    d = jnp.maximum(enc @ w4 + b4, 0.0)
    d = jnp.maximum(d @ w5 + b5, 0.0)
    dec = jax.nn.sigmoid(d @ w6 + b6)
    return enc, dec


if __name__ == "__main__":
    key = jax.random.PRNGKey(0)
    k_params, k_x, k_x2 = jax.random.split(key, 3)

    params = init_params(k_params)

    # Small test (single grid step; default tile clamps to the padded batch).
    batch = 8
    x = jax.random.normal(k_x, (batch, 12), jnp.float32)
    enc, dec = autoencoder_forward(x, params)
    jax.block_until_ready((enc, dec))

    enc_ref, dec_ref = reference_forward(x, params)
    assert enc.shape == (batch, 6) and dec.shape == (batch, 12)
    assert jnp.allclose(enc, enc_ref, atol=1e-5, rtol=1e-5)
    assert jnp.allclose(dec, dec_ref, atol=1e-4, rtol=1e-4)   # exact sigmoid now

    # Multi-tile grid + batch-padding test (3 grid steps, still small / fast).
    batch2 = 300
    x2 = jax.random.normal(k_x2, (batch2, 12), jnp.float32)
    enc2, dec2 = autoencoder_forward(x2, params, tile_b=128)
    jax.block_until_ready((enc2, dec2))
    enc2_ref, dec2_ref = reference_forward(x2, params)
    assert enc2.shape == (batch2, 6) and dec2.shape == (batch2, 12)
    assert jnp.allclose(enc2, enc2_ref, atol=1e-5, rtol=1e-5)
    assert jnp.allclose(dec2, dec2_ref, atol=1e-4, rtol=1e-4)

    # Default-tile path with the >=2-step (v7x megacore) clamp exercised.
    enc3, dec3 = autoencoder_forward(x2, params)   # tile chosen as 256 -> grid=2
    jax.block_until_ready((enc3, dec3))
    assert jnp.allclose(enc3, enc2_ref, atol=1e-5, rtol=1e-5)
    assert jnp.allclose(dec3, dec2_ref, atol=1e-4, rtol=1e-4)

    print("KERNEL_OK")
</pallas_src>

<mosaic_0001>
module attributes {stable_mosaic.version = 11 : i64} {
  func.func @_autoencoder_kernel(%arg0: i32, %arg1: memref<72x128xf32, #tpu.memory_space<vmem>>, %arg2: memref<12x128xf32, #tpu.memory_space<vmem>>, %arg3: memref<6x128xf32, #tpu.memory_space<vmem>>, %arg4: memref<12x128xf32, #tpu.memory_space<vmem>>) attributes {dimension_semantics = [#tpu.dimension_semantics<parallel>], iteration_bounds = array<i64: 1>, scalar_prefetch = 0 : i64, scratch_operands = 0 : i64, tpu.core_type = #tpu.core_type<tc>, window_params = [{pipeline_mode = #tpu.pipeline_mode<synchronous>, transform_indices = @transform_0, window_bounds = array<i64: 72, 128>}, {transform_indices = @transform_1, window_bounds = array<i64: 12, 128>}, {transform_indices = @transform_2, window_bounds = array<i64: 6, 128>}, {transform_indices = @transform_3, window_bounds = array<i64: 12, 128>}]} {
    %c0 = arith.constant 0 : index
    %c0_0 = arith.constant 0 : index
    %0 = vector.load %arg2[%c0, %c0_0] : memref<12x128xf32, #tpu.memory_space<vmem>>, vector<12x128xf32>
    %c0_1 = arith.constant 0 : index
    %c0_2 = arith.constant 0 : index
    %1 = vector.load %arg1[%c0_1, %c0_2] : memref<72x128xf32, #tpu.memory_space<vmem>>, vector<10x12xf32>
    %c0_3 = arith.constant 0 : index
    %c12 = arith.constant 12 : index
    %2 = vector.load %arg1[%c0_3, %c12] : memref<72x128xf32, #tpu.memory_space<vmem>>, vector<10x1xf32>
    %cst = arith.constant dense<0.000000e+00> : vector<10x128xf32>
    %3 = tpu.matmul %1, %0, %cst {dimension_numbers = #tpu.dot_dimension_numbers<[1], [0], [0], [1], [0, 0, 1, 1], [], []>} : vector<10x12xf32>, vector<12x128xf32>, vector<10x128xf32> -> vector<10x128xf32>
    %4 = vector.broadcast %2 : vector<10x1xf32> to vector<10x128xf32>
    %5 = arith.addf %3, %4 : vector<10x128xf32>
    %cst_4 = arith.constant 0.000000e+00 : f32
    %6 = vector.broadcast %cst_4 : f32 to vector<10x128xf32>
    %7 = arith.maximumf %5, %6 : vector<10x128xf32>
    %c16 = arith.constant 16 : index
    %c0_5 = arith.constant 0 : index
    %8 = vector.load %arg1[%c16, %c0_5] : memref<72x128xf32, #tpu.memory_space<vmem>>, vector<8x10xf32>
    %c16_6 = arith.constant 16 : index
    %c10 = arith.constant 10 : index
    %9 = vector.load %arg1[%c16_6, %c10] : memref<72x128xf32, #tpu.memory_space<vmem>>, vector<8x1xf32>
    %cst_7 = arith.constant dense<0.000000e+00> : vector<8x128xf32>
    %10 = tpu.matmul %8, %7, %cst_7 {dimension_numbers = #tpu.dot_dimension_numbers<[1], [0], [0], [1], [0, 0, 1, 1], [], []>} : vector<8x10xf32>, vector<10x128xf32>, vector<8x128xf32> -> vector<8x128xf32>
    %11 = vector.broadcast %9 : vector<8x1xf32> to vector<8x128xf32>
    %12 = arith.addf %10, %11 : vector<8x128xf32>
    %cst_8 = arith.constant 0.000000e+00 : f32
    %13 = vector.broadcast %cst_8 : f32 to vector<8x128xf32>
    %14 = arith.maximumf %12, %13 : vector<8x128xf32>
    %c24 = arith.constant 24 : index
    %c0_9 = arith.constant 0 : index
    %15 = vector.load %arg1[%c24, %c0_9] : memref<72x128xf32, #tpu.memory_space<vmem>>, vector<6x8xf32>
    %c24_10 = arith.constant 24 : index
    %c8 = arith.constant 8 : index
    %16 = vector.load %arg1[%c24_10, %c8] : memref<72x128xf32, #tpu.memory_space<vmem>>, vector<6x1xf32>
    %cst_11 = arith.constant dense<0.000000e+00> : vector<6x128xf32>
    %17 = tpu.matmul %15, %14, %cst_11 {dimension_numbers = #tpu.dot_dimension_numbers<[1], [0], [0], [1], [0, 0, 1, 1], [], []>} : vector<6x8xf32>, vector<8x128xf32>, vector<6x128xf32> -> vector<6x128xf32>
    %18 = vector.broadcast %16 : vector<6x1xf32> to vector<6x128xf32>
    %19 = arith.addf %17, %18 : vector<6x128xf32>
    %c0_12 = arith.constant 0 : index
    %c0_13 = arith.constant 0 : index
    %20 = vector.load %arg3[%c0_12, %c0_13] : memref<6x128xf32, #tpu.memory_space<vmem>>, vector<6x128xf32>
    tpu.vector_store %arg3[%c0_12, %c0_13], %19 {strides = array<i32>} : memref<6x128xf32, #tpu.memory_space<vmem>>, vector<6x128xf32>,
    %c32 = arith.constant 32 : index
    %c0_14 = arith.constant 0 : index
    %21 = vector.load %arg1[%c32, %c0_14] : memref<72x128xf32, #tpu.memory_space<vmem>>, vector<8x6xf32>
    %c32_15 = arith.constant 32 : index
    %c6 = arith.constant 6 : index
    %22 = vector.load %arg1[%c32_15, %c6] : memref<72x128xf32, #tpu.memory_space<vmem>>, vector<8x1xf32>
    %cst_16 = arith.constant dense<0.000000e+00> : vector<8x128xf32>
    %23 = tpu.matmul %21, %19, %cst_16 {dimension_numbers = #tpu.dot_dimension_numbers<[1], [0], [0], [1], [0, 0, 1, 1], [], []>} : vector<8x6xf32>, vector<6x128xf32>, vector<8x128xf32> -> vector<8x128xf32>
    %24 = vector.broadcast %22 : vector<8x1xf32> to vector<8x128xf32>
    %25 = arith.addf %23, %24 : vector<8x128xf32>
    %cst_17 = arith.constant 0.000000e+00 : f32
    %26 = vector.broadcast %cst_17 : f32 to vector<8x128xf32>
    %27 = arith.maximumf %25, %26 : vector<8x128xf32>
    %c40 = arith.constant 40 : index
    %c0_18 = arith.constant 0 : index
    %28 = vector.load %arg1[%c40, %c0_18] : memref<72x128xf32, #tpu.memory_space<vmem>>, vector<10x8xf32>
    %c40_19 = arith.constant 40 : index
    %c8_20 = arith.constant 8 : index
    %29 = vector.load %arg1[%c40_19, %c8_20] : memref<72x128xf32, #tpu.memory_space<vmem>>, vector<10x1xf32>
    %cst_21 = arith.constant dense<0.000000e+00> : vector<10x128xf32>
    %30 = tpu.matmul %28, %27, %cst_21 {dimension_numbers = #tpu.dot_dimension_numbers<[1], [0], [0], [1], [0, 0, 1, 1], [], []>} : vector<10x8xf32>, vector<8x128xf32>, vector<10x128xf32> -> vector<10x128xf32>
    %31 = vector.broadcast %29 : vector<10x1xf32> to vector<10x128xf32>
    %32 = arith.addf %30, %31 : vector<10x128xf32>
    %cst_22 = arith.constant 0.000000e+00 : f32
    %33 = vector.broadcast %cst_22 : f32 to vector<10x128xf32>
    %34 = arith.maximumf %32, %33 : vector<10x128xf32>
    %c56 = arith.constant 56 : index
    %c0_23 = arith.constant 0 : index
    %35 = vector.load %arg1[%c56, %c0_23] : memref<72x128xf32, #tpu.memory_space<vmem>>, vector<12x10xf32>
    %c56_24 = arith.constant 56 : index
    %c10_25 = arith.constant 10 : index
    %36 = vector.load %arg1[%c56_24, %c10_25] : memref<72x128xf32, #tpu.memory_space<vmem>>, vector<12x1xf32>
    %cst_26 = arith.constant dense<0.000000e+00> : vector<12x128xf32>
    %37 = tpu.matmul %35, %34, %cst_26 {dimension_numbers = #tpu.dot_dimension_numbers<[1], [0], [0], [1], [0, 0, 1, 1], [], []>} : vector<12x10xf32>, vector<10x128xf32>, vector<12x128xf32> -> vector<12x128xf32>
    %38 = vector.broadcast %36 : vector<12x1xf32> to vector<12x128xf32>
    %39 = arith.addf %37, %38 : vector<12x128xf32>
    %cst_27 = arith.constant 0.000000e+00 : f32
    %40 = vector.broadcast %cst_27 : f32 to vector<12x128xf32>
    %41 = arith.subf %40, %39 : vector<12x128xf32>
    %42 = math.exp %41 : vector<12x128xf32>
    %cst_28 = arith.constant 1.000000e+00 : f32
    %43 = vector.broadcast %cst_28 : f32 to vector<12x128xf32>
    %44 = arith.addf %43, %42 : vector<12x128xf32>
    %cst_29 = arith.constant 1.000000e+00 : f32
    %45 = vector.broadcast %cst_29 : f32 to vector<12x128xf32>
    %46 = arith.divf %45, %44 : vector<12x128xf32>
    %c0_30 = arith.constant 0 : index
    %c0_31 = arith.constant 0 : index
    %47 = vector.load %arg4[%c0_30, %c0_31] : memref<12x128xf32, #tpu.memory_space<vmem>>, vector<12x128xf32>
    tpu.vector_store %arg4[%c0_30, %c0_31], %46 {strides = array<i32>} : memref<12x128xf32, #tpu.memory_space<vmem>>, vector<12x128xf32>,
    return
  }
  func.func @transform_0(%arg0: i32) -> (i32, i32) {
    %c0_i32 = arith.constant 0 : i32
    %c0_i32_0 = arith.constant 0 : i32
    %c0_i32_1 = arith.constant 0 : i32
    return %c0_i32, %c0_i32_0 : i32, i32
  }
  func.func @transform_1(%arg0: i32) -> (i32, i32) {
    %c0_i32 = arith.constant 0 : i32
    %c0_i32_0 = arith.constant 0 : i32
    return %c0_i32, %arg0 : i32, i32
  }
  func.func @transform_2(%arg0: i32) -> (i32, i32) {
    %c0_i32 = arith.constant 0 : i32
    %c0_i32_0 = arith.constant 0 : i32
    return %c0_i32, %arg0 : i32, i32
  }
  func.func @transform_3(%arg0: i32) -> (i32, i32) {
    %c0_i32 = arith.constant 0 : i32
    %c0_i32_0 = arith.constant 0 : i32
    return %c0_i32, %arg0 : i32, i32
  }
}

</mosaic_0001>

<bundles_post_ra>
// kernel: tpu_custom_call.1
= control target key start
LH: loop header
LB: loop body
LE: loop exit
PB: predicated region body
PF: predicated region fallthrough
CT: control target
= control target key end

     0   :  { %9 = vsyncpa [#allocation3], 0  ;;  %s943_s0 = inlined_call_operand.hbm [shape: f32[72,128], index: 0, kind: input, shape index: {}]   ;;  %s944_s1 = inlined_call_operand.hbm [shape: f32[12,128], index: 1, kind: input, shape index: {}]   ;;  %s945_s2 = inlined_call_operand.hbm [shape: f32[6,128], index: 2, kind: output, shape index: {0}]   ;;  %s946_s3 = inlined_call_operand.hbm [shape: f32[12,128], index: 3, kind: output, shape index: {1}]  }
   0x1   :  { %10 = vsyncpa [#allocation6], 0 }
   0x2   :  { %11 = vsyncpa [#allocation4], 0 }
   0x3   :  { %12 = vsyncpa [#allocation9], 0  ;;  %s831_s12 = smov [#allocation2]   ;;  %s735_s16 = scalar_lea.hbm %s943_s0, 1152 }
   0x4   :  { %s18_s13 = sshll.u32 %s831_s12, 4  ;;  %p736_p0 = scmp.ne.s32.totalorder %s943_s0, %s735_s16  ;;  %s19_s13 = int_to_ptr.vmem [resolvable:$true] %s18_s13 }
   0x5   :  { %p739_p1 = scmp.lt.u32.totalorder %s735_s16, %s943_s0 }
   0x7   :  { %p741_p2 = pnand %p739_p1, %p736_p0 }
   0x9   :  { %744 = shalt.err (!%p741_p2)
}
   0xa   :  { %s745_s21 = scalar_lea.vmem %s19_s13, 1152  ;;  %p750_p4 = scmp.lt.s32.totalorder %s19_s13, %s19_s13 }
   0xb   :  { %p746_p3 = scmp.ne.s32.totalorder %s19_s13, %s745_s21  ;;  %p751_p5 = scmp.lt.s32.totalorder %s745_s21, %s745_s21 }
   0xd   :  { %p752_p6 = por %p751_p5, %p750_p4 }
   0xf   :  { %p753_p7 = pnand %p752_p6, %p746_p3 }
  0x11   :  { %756 = shalt.err (!%p753_p7)
}
  0x12   :  { %s832_s22 = smov 128   ;;  %s833_s23 = smov 8  }
  0x13   :  { %24 = dma.hbm_to_vmem [thread:$0]  %s943_s0, 1152, %s19_s13, [#allocation3], %s832_s22, %s832_s22, %s833_s23  }
  0x14   :  { %s834_s26 = smov [#allocation5]   ;;  %s757_s30 = scalar_lea.hbm %s944_s1, 256 }
  0x15   :  { %s30_s27 = sshll.u32 %s834_s26, 4  ;;  %p758_p8 = scmp.ne.s32.totalorder %s944_s1, %s757_s30  ;;  %s31_s27 = int_to_ptr.vmem [resolvable:$true] %s30_s27 }
  0x16   :  { %p761_p9 = scmp.lt.u32.totalorder %s757_s30, %s944_s1 }
  0x18   :  { %p763_p10 = pnand %p761_p9, %p758_p8 }
  0x1a   :  { %766 = shalt.err (!%p763_p10)
}
  0x1b   :  { %s767_s8 = scalar_lea.vmem %s31_s27, 256  ;;  %p772_p12 = scmp.lt.s32.totalorder %s31_s27, %s31_s27 }
  0x1c   :  { %p768_p11 = scmp.ne.s32.totalorder %s31_s27, %s767_s8  ;;  %p773_p13 = scmp.lt.s32.totalorder %s767_s8, %s767_s8 }
  0x1e   :  { %p774_p0 = por %p773_p13, %p772_p12 }
  0x20   :  { %p775_p1 = pnand %p774_p0, %p768_p11 }
  0x22   :  { %778 = shalt.err (!%p775_p1)
}
  0x23   :  { %36 = dma.hbm_to_vmem [thread:$0]  %s944_s1, 256, %s31_s27, [#allocation6], %s832_s22, %s832_s22, %s833_s23  }
  0x24   :  { %823 = dma.done.wait [#allocation3], 1152  }
  0x25   :  { %824 = vsyncadd [#allocation3], 4294966144 }
  0x26   :  { %825 = dma.done.wait [#allocation6], 256  }
  0x27   :  { %826 = vsyncadd [#allocation6], 4294967040  ;;  %v835_v0 = vmov 12   ;;  %vm62_vm0 = vcmask 1043456   ;;  %vm57_vm1 = vcmask 97280   ;;  %vm836_vm2 = vmmov 1  }
  0x28   :  { %721 = vset.pattern.permute.xlu0 %v835_v0  ;;  %vm692_vm3 = vmpackc.low %vm62_vm0, %vm836_vm2  ;;  %v43_v1 = vld [vmem:[#allocation5] sm:$0xff]  ;;  %v44_v2 = vld [vmem:[#allocation5 + $0x8] sm:$0xf]  ;;  %v837_v6 = vmov 0.0|0.0   ;;  %vm838_vm4 = vmmov 0   ;;  %v839_v7 = vmov 0.0  }
  0x29   :  { %v45_v3 = vld [vmem:[#allocation2] sm:$0xff]  ;;  %v691_v4 = vpack.c.bf16 %v44_v2, %v43_v1  ;;  %v46_v5 = vld [vmem:[#allocation2 + $0x8] sm:$0x3]  ;;  %697 = vmatprep.subr.bf16.mxu1 %v837_v6  ;;  %666 = vmatprep.mubr.msk.f32.mxu1 %vm838_vm4, %v839_v7  ;;  %v143_v8 = vld [vmem:[#allocation2 + $0x10] sm:$0xff]  ;;  %v840_v9 = vmov 10   ;;  %vm152_vm5 = vcmask 1041408  }
  0x2a   :  { %659 = vmatprep.mubr.msk.f32.mxu0 %vm57_vm1, %v45_v3  ;;  %49 = vperm.xlu0 %721, %v45_v3   ;;  %vm899_vm6 = vmpackc.low %vm152_vm5, %vm836_vm2  ;;  %vm149_vm7 = vcmask 80896   ;;  %v227_v20 = vld [vmem:[#allocation2 + $0x18] sm:$0x3f]  ;;  %v841_v21 = vmov 8   ;;  %v391_v22 = vld [vmem:[#allocation2 + $0x28] sm:$0xff]  ;;  %vm233_vm8 = vcmask 64512  }
  0x2b   :  { %693 = vmatprep.subr.msk.bf16.mxu0 %vm692_vm3, %v691_v4  ;;  %722 = vset.pattern.permute.xlu1 %v840_v9  ;;  %v392_v23 = vld [vmem:[#allocation2 + $0x30] sm:$0x3]  ;;  %v307_v29 = vld [vmem:[#allocation2 + $0x20] sm:$0xff]  ;;  %v842_v30 = vmov 6   ;;  %vm316_vm9 = vcmask 1045504   ;;  %vm313_vm10 = vcmask 48128  }
  0x2c   :  { %696 = vmatpush3.bf16.msk.msra.mxu0 %vm692_vm3, %v691_v4  ;;  %146 = vperm.xlu1 %722, %v143_v8   ;;  %v484_v40 = vld [vmem:[#allocation2 + $0x38] sm:$0xff]  ;;  %v485_v41 = vld [vmem:[#allocation2 + $0x40] sm:$0xf]  ;;  %s843_s1 = smov [#allocation7]  }
  0x2d   :  { %669 = vmatprep.subr.mxu0 %v839_v7  ;;  %s598_s10 = sshll.u32 %s843_s1, 4  ;;  %s599_s10 = int_to_ptr.vmem [resolvable:$true] %s598_s10 }
  0x2e   :  { %54 = vperm.xlu0 %721, %v46_v5   ;;  %s779_s11 = scalar_lea.vmem %s599_s10, 128  ;;  %p784_p3 = scmp.lt.s32.totalorder %s599_s10, %s599_s10 }
  0x2f   :  { %660 = vmatmul.mubr.msk.f32.vlgmr.msra.gmra.mrb[0].mxu0 %vm57_vm1, %v46_v5  ;;  %p780_p2 = scmp.ne.s32.totalorder %s599_s10, %s779_s11  ;;  %p785_p4 = scmp.lt.s32.totalorder %s779_s11, %s779_s11 }
  0x30   :  { %671 = vmatprep.mubr.msk.f32.mxu0 %vm838_vm4, %v839_v7  ;;  %723 = vset.pattern.permute.xlu1 %v841_v21 }
  0x31   :  { %230 = vperm.xlu1 %723, %v227_v20   ;;  %p786_p5 = por %p785_p4, %p784_p3 }
  0x32   :  { %724 = vset.pattern.permute.xlu0 %v842_v30 }
  0x33   :  { %310 = vperm.xlu0 %724, %v307_v29   ;;  %p787_p6 = pnand %p786_p5, %p780_p2 }
  0x35   :  { %395 = vperm.xlu1 %723, %v391_v22  }
  0x37   :  { %725 = vset.pattern.permute.xlu0 %v840_v9 }
  0x38   :  { %488 = vperm.xlu0 %725, %v484_v40  }
  0x39   :  { %400 = vperm.xlu1 %723, %v392_v23  }
  0x3d   :  { %726 = vset.pattern.permute.xlu1 %v840_v9 }
  0x3e   :  { %493 = vperm.xlu1 %726, %v485_v41  }
  0xa9   :  { %v50_v10 = vpop.permute.xlu0 %49 }
  0xab   :  { %v147_v24 = vpop.permute.xlu1 %146 }
  0xad   :  { %v55_v11 = vpop.permute.xlu0 %54 }
  0xb0   :  { %v231_v31 = vpop.permute.xlu1 %230 }
  0xb2   :  { %v311_v35 = vpop.permute.xlu0 %310 }
  0xb4   :  { %v396_v42 = vpop.permute.xlu1 %395 }
  0xb8   :  { %v401_v43 = vpop.permute.xlu1 %400 }
 0x102   :  { %v661_v12 = vpop.f32.mrb[0].mxu0 }
 0x103   :  { %v138_v13 = vadd.f32 %v661_v12, %v55_v11  ;;  %v132_v14 = vpop.f32.mrb[1].mxu0 }
 0x104   :  { %v133_v15 = vadd.f32 %v132_v14, %v50_v10 }
 0x105   :  { %v142_v16 = vmax.f32 %v138_v13, 0.0 }
 0x106   :  { %v141_v17 = vmax.f32 %v133_v15, 0.0 }
 0x108   :  { %v698_v19 = vpack.c.bf16 %v142_v16, %v141_v17 }
 0x10a   :  { %700 = vmatpush3.bf16.msk.msra.mxu1 %vm899_vm6, %v698_v19 }
 0x10b   :  { %674 = vmatprep.subr.mxu1 %v839_v7 }
 0x10d   :  { %667 = vmatmul.mubr.msk.f32.vlgmr.msra.gmra.mrb[0].mxu1 %vm149_vm7, %v143_v8 }
 0x10e   :  { %676 = vmatprep.mubr.msk.f32.mxu1 %vm838_vm4, %v839_v7 }
 0x1e0   :  { %v222_v25 = vpop.f32.mrb[0].mxu1 }
 0x1e1   :  { %v223_v26 = vadd.f32 %v222_v25, %v147_v24  ;;  %v668_v27 = vpop.f32.mrb[1].mxu1 }
 0x1e3   :  { %v226_v28 = vmax.f32 %v223_v26, 0.0 }
 0x1e5   :  { %670 = vmatpush3.msra.mxu0 %v226_v28 }
 0x1e6   :  { %672 = vmatmul.mubr.msk.f32.vlgmr.msra.gmra.mrb[2].mxu0 %vm233_vm8, %v227_v20 }
 0x1e7   :  { %681 = vmatprep.mubr.msk.f32.mxu0 %vm233_vm8, %v391_v22 }
 0x2b9   :  { %v302_v32 = vpop.f32.mrb[2].mxu0 }
 0x2ba   :  { %v303_v33 = vadd.f32 %v302_v32, %v231_v31  ;;  %v673_v34 = vpop.f32.mrb[3].mxu0 }
 0x2bc   :  { %306 = vst [vmem:[#allocation7] sm:$0x3f] %v303_v33  ;;  %675 = vmatpush3.msk.msra.mxu1 %vm316_vm9, %v303_v33 }
 0x2bd   :  { %677 = vmatmul.mubr.msk.f32.vlgmr.msra.gmra.mrb[2].mxu1 %vm313_vm10, %v307_v29 }
 0x2be   :  { %688 = vmatprep.mubr.msk.f32.mxu1 %vm149_vm7, %v484_v40 }
 0x390   :  { %v386_v36 = vpop.f32.mrb[2].mxu1 }
 0x391   :  { %v387_v37 = vadd.f32 %v386_v36, %v311_v35  ;;  %v678_v38 = vpop.f32.mrb[3].mxu1 }
 0x393   :  { %v390_v39 = vmax.f32 %v387_v37, 0.0 }
 0x395   :  { %679 = vmatprep.subr.mxu0 %v390_v39 }
 0x396   :  { %680 = vmatpush3.msra.mxu0 %v390_v39 }
 0x397   :  { %682 = vmatmul.mubr.msk.f32.vlgmr.msra.gmra.mrb[4].mxu0 %vm233_vm8, %v392_v23 }
 0x46a   :  { %v683_v44 = vpop.f32.mrb[4].mxu0 }
 0x46b   :  { %v479_v45 = vadd.f32 %v683_v44, %v401_v43  ;;  %v473_v46 = vpop.f32.mrb[5].mxu0 }
 0x46c   :  { %v474_v47 = vadd.f32 %v473_v46, %v396_v42 }
 0x46d   :  { %v483_v48 = vmax.f32 %v479_v45, 0.0 }
 0x46e   :  { %v482_v49 = vmax.f32 %v474_v47, 0.0 }
 0x470   :  { %v701_v50 = vpack.c.bf16 %v483_v48, %v482_v49 }
 0x472   :  { %703 = vmatprep.subr.msk.bf16.mxu1 %vm899_vm6, %v701_v50 }
 0x473   :  { %706 = vmatpush3.bf16.msk.msra.mxu1 %vm899_vm6, %v701_v50 }
 0x476   :  { %689 = vmatmul.mubr.msk.f32.vlgmr.msra.gmra.mrb[4].mxu1 %vm149_vm7, %v485_v41 }
 0x477   :  { %790 = shalt.err (!%p787_p6)
}
 0x478   :  { %s791_s14 = scalar_lea.hbm %s945_s2, 128 }
 0x479   :  { %p792_p7 = scmp.ne.s32.totalorder %s945_s2, %s791_s14  ;;  %p795_p8 = scmp.lt.u32.totalorder %s791_s14, %s945_s2 }
 0x47b   :  { %p797_p9 = pnand %p795_p8, %p792_p7 }
 0x47d   :  { %800 = shalt.err (!%p797_p9)
}
 0x47e   :  { %601 = dma.vmem_to_hbm [thread:$0]  %s599_s10, 128, %s945_s2, [#allocation4]   ;;  %v494_v51 = vpop.permute.xlu1 %493  ;;  %v489_v52 = vpop.permute.xlu0 %488 }
 0x47f   :  { %s844_s21 = smov [#allocation8]  }
 0x480   :  { %s607_s2 = sshll.u32 %s844_s21, 4  ;;  %s608_s2 = int_to_ptr.vmem [resolvable:$true] %s607_s2 }
 0x481   :  { %s801_s24 = scalar_lea.vmem %s608_s2, 256  ;;  %p806_p11 = scmp.lt.s32.totalorder %s608_s2, %s608_s2 }
 0x482   :  { %p802_p10 = scmp.ne.s32.totalorder %s608_s2, %s801_s24  ;;  %p807_p12 = scmp.lt.s32.totalorder %s801_s24, %s801_s24 }
 0x484   :  { %p808_p13 = por %p807_p12, %p806_p11 }
 0x486   :  { %p809_p0 = pnand %p808_p13, %p802_p10 }
 0x549   :  { %v690_v53 = vpop.f32.mrb[4].mxu1 }
 0x54a   :  { %v575_v54 = vadd.f32 %v690_v53, %v494_v51  ;;  %v569_v55 = vpop.f32.mrb[5].mxu1 }
 0x54b   :  { %v570_v56 = vadd.f32 %v569_v55, %v489_v52 }
 0x54c   :  { %v579_v57 = vsub.f32 0.0, %v575_v54 }
 0x54d   :  { %v578_v58 = vsub.f32 0.0, %v570_v56 }
 0x54e   :  { %v582_v59 = vmul.f32 1.442695, %v579_v57 }
 0x54f   :  { %v580_v60 = vmul.f32 1.442695, %v578_v58 }
 0x550   :  { %727 = vpow2.f32 %v582_v59 }
 0x551   :  { %729 = vpow2.f32 %v580_v60 }
 0x55a   :  { %v728_v61 = vpop.eup %727 }
 0x55b   :  { %v730_v62 = vpop.eup %729  ;;  %v585_v63 = vadd.f32 1.0, %v728_v61 }
 0x55c   :  { %v584_v0 = vadd.f32 1.0, %v730_v62 }
 0x55d   :  { %731 = vrcp.f32 %v585_v63 }
 0x55e   :  { %733 = vrcp.f32 %v584_v0 }
 0x567   :  { %v732_v1 = vpop.eup %731 }
 0x568   :  { %v734_v2 = vpop.eup %733  ;;  %591 = vst [vmem:[#allocation8 + $0x8] sm:$0xf] %v732_v1 }
 0x569   :  { %590 = vst [vmem:[#allocation8] sm:$0xff] %v734_v2 }
 0x56a   :  { %812 = shalt.err (!%p809_p0)
}
 0x56b   :  { %s813_s27 = scalar_lea.hbm %s946_s3, 256 }
 0x56c   :  { %p814_p1 = scmp.ne.s32.totalorder %s946_s3, %s813_s27  ;;  %p817_p2 = scmp.lt.u32.totalorder %s813_s27, %s946_s3 }
 0x56e   :  { %p819_p3 = pnand %p817_p2, %p814_p1 }
 0x570   :  { %822 = shalt.err (!%p819_p3)
}
 0x571   :  { %613 = dma.vmem_to_hbm [thread:$0]  %s608_s2, 256, %s946_s3, [#allocation9], %s832_s22, %s832_s22, %s833_s23  }
 0x572   :  { %827 = dma.done.wait [#allocation4], 128  }
 0x573   :  { %828 = vsyncadd [#allocation4], 4294967168 }
 0x574   :  { %829 = dma.done.wait [#allocation9], 256  }
 0x575   :  { %830 = vsyncadd [#allocation9], 4294967040 }
 0x576   :  { %620 = vsyncpa [#allocation3], 1 }
 0x577   :  { %621 = vsyncpa [#allocation6], 1 }
 0x578   :  { %622 = vsyncpa [#allocation4], 1 }
 0x579   :  { %623 = vsyncpa [#allocation9], 1 }

</bundles_post_ra>
